<compile_context>
chip_gen: v6e
topology: v6e:2x2x1
jax: 0.10.0
libtpu: 0.0.40
codegen_flags: <defaults>
</compile_context>

<pallas_src>
import jax
import jax.numpy as jnp
from jax.experimental import pallas as pl
from jax.experimental.pallas import tpu as pltpu


def _round_up(x, m):
    return (x + m - 1) // m * m


def _vmem_capacity_bytes():
    try:
        return int(pltpu.get_tpu_info().vmem_capacity_bytes)
    except Exception:
        return 64 * 1024 * 1024          # conservative fallback (v7x per-TC)


# ---------------------------------------------------------------------------
# Kernel: one (row-tile i, col-tile j, k-tile) step of a 2-group grouped
# matmul.  gid_ref (scalar prefetch) selects Wv (0) or Wt (1) per row tile in
# the weight index_map; the body is a plain accumulating matmul.
# ---------------------------------------------------------------------------
def grouped_linear_kernel(gid_ref, x_ref, w_ref, o_ref, acc_ref):
    del gid_ref                          # consumed only by the index_maps
    k = pl.program_id(2)

    @pl.when(k == 0)
    def _():
        acc_ref[...] = jnp.zeros_like(acc_ref)

    acc_ref[...] += jnp.dot(x_ref[...], w_ref[0],
                            preferred_element_type=jnp.float32)

    @pl.when(k == pl.num_programs(2) - 1)
    def _():
        o_ref[...] = acc_ref[...].astype(o_ref.dtype)


# ---------------------------------------------------------------------------
# One-time weight preparation (hoisted out of the per-call path).
# ---------------------------------------------------------------------------
def prepare_weights(w_v, w_t, *, mxu_dtype=None, tn_target=256, tk_target=2048,
                    vmem_budget_bytes=None, vmem_limit_bytes=None):
    """Pack Wv/Wt once into a (2, K_pad, N_pad) stack the kernel can index.

    mxu_dtype: matmul-input dtype.  bf16 is recommended on v5e/v6e/v7x (the
    MXU is bf16-native on all of them); accumulation stays fp32 in-kernel.
    """
    out_dim, K = w_v.shape
    assert w_t.shape == (out_dim, K)
    compute_dtype = jnp.dtype(w_v.dtype if mxu_dtype is None else mxu_dtype)
    itemsize = compute_dtype.itemsize

    vmem_cap = _vmem_capacity_bytes()
    budget = vmem_budget_bytes or vmem_cap // 2        # ~64 MiB v5e/v6e, ~32 MiB v7x
    limit = vmem_limit_bytes or int(vmem_cap * 0.75)   # ~96 MiB v5e/v6e, ~48 MiB v7x

    # N (out_dim) tiling: lane-dense, 256-wide when divisibility allows.
    N_pad = _round_up(out_dim, 128)
    tn = min(tn_target, N_pad)
    while N_pad % tn != 0:
        tn //= 2

    # K (in_dim) tiling: only when the full contraction would blow VMEM.
    tk = K if K <= tk_target else tk_target            # tk_target multiple of 256

    # Keep a double-buffered weight tile to at most ~1/3 of the VMEM budget.
    while 2 * tk * tn * itemsize > budget // 3:
        if tk < K and tk > 256:
            tk //= 2
        elif tn > 128:
            tn //= 2
        else:
            break
    K_pad = K if tk >= K else _round_up(K, tk)

    def _prep(w):                                       # (out_dim,K) -> (K_pad,N_pad)
        wt = w.T.astype(compute_dtype)
        return jnp.pad(wt, ((0, K_pad - K), (0, N_pad - out_dim)))

    w_stack = jnp.stack([_prep(w_v), _prep(w_t)], axis=0)   # (2, K_pad, N_pad)

    return dict(w_stack=w_stack, compute_dtype=compute_dtype,
                K=K, K_pad=K_pad, out_dim=out_dim, N_pad=N_pad,
                tn=tn, tk=tk,
                vmem_budget_bytes=budget, vmem_limit_bytes=limit)


# ---------------------------------------------------------------------------
# Per-call wrapper: partition rows by mask, run the grouped matmul, un-permute.
# ---------------------------------------------------------------------------
def masked_dual_linear(params, x, visual_mask, *, tm_target=None):
    """out[b,s] = x[b,s] @ Wv^T if visual_mask[b,s] else x[b,s] @ Wt^T."""
    w_stack = params["w_stack"]
    compute_dtype = params["compute_dtype"]
    K, K_pad = params["K"], params["K_pad"]
    out_dim, N_pad = params["out_dim"], params["N_pad"]
    tn, tk = params["tn"], params["tk"]
    budget = params["vmem_budget_bytes"]
    limit = params["vmem_limit_bytes"]

    B, S, Kx = x.shape
    assert Kx == K
    out_dtype = x.dtype
    M = B * S
    itemsize = jnp.dtype(compute_dtype).itemsize
    out_isize = jnp.dtype(out_dtype).itemsize

    # ---- row tile: big (amortizes weight re-streaming / per-step overhead),
    #      bounded by VMEM and by group-alignment padding waste; shrink tm
    #      before tn/tk so MXU / store lane width stays wide. -----------------
    if tm_target is None:
        tm_target = 1024 if budget >= 48 * 1024 * 1024 else 512
    tm = 128
    for cand in (1024, 512, 256, 128):
        if cand <= tm_target and cand <= _round_up(M, 128):
            tm = cand
            break
    while tm > 128 and 2 * tm > max(256, M):            # cap padded-row waste
        tm //= 2

    def _vmem_est(tm_):
        return (2 * (tm_ * tk * itemsize                 # x tile   (dbl-buffered)
                     + tk * tn * itemsize                # W tile   (dbl-buffered)
                     + tm_ * tn * out_isize)             # out tile (dbl-buffered)
                + tm_ * tn * 4)                          # fp32 accumulator
    while _vmem_est(tm) > budget and tm > 128:
        tm //= 2
    # TODO(synk): sweep pipeline_mode=pl.Buffered(3) on the weight BlockSpec if
    # profiling shows exposed weight DMA in the memory-bound (small-M) regime.

    # ---- partition rows by mask: visual rows first, text rows at the next
    #      tm-aligned offset, so every row tile belongs to exactly one group. --
    mi = visual_mask.reshape(M).astype(jnp.int32)        # 1 = visual
    n_v = jnp.sum(mi)
    rank_v = jnp.cumsum(mi) - mi                         # exclusive ranks
    rank_t = jnp.cumsum(1 - mi) - (1 - mi)
    text_base = ((n_v + tm - 1) // tm) * tm              # tm-aligned, dynamic
    dest = jnp.where(mi == 1, rank_v, text_base + rank_t).astype(jnp.int32)

    M_pad = _round_up(M, tm) + tm                        # static upper bound
    num_m, num_n, num_k = M_pad // tm, N_pad // tn, K_pad // tk

    x2 = x.reshape(M, K).astype(compute_dtype)
    if K_pad != K:
        x2 = jnp.pad(x2, ((0, 0), (0, K_pad - K)))
    x_sorted = jnp.zeros((M_pad, K_pad), compute_dtype).at[dest].set(x2)

    # Per-row-tile group id (0 -> Wv, 1 -> Wt), consumed via scalar prefetch.
    tile_starts = jnp.arange(num_m, dtype=jnp.int32) * tm
    gid = jnp.where(tile_starts < text_base, 0, 1).astype(jnp.int32)

    # ---- grid & index maps.  num_m >= 2 by construction, so the leading
    #      parallel axis always has work for both v7x TensorCores; keep a
    #      defensive swap so the N axis leads if that ever changes. -----------
    if num_m == 1 and num_n > 1:
        grid = (num_n, num_m, num_k)
        x_map = lambda j, i, k, gid_ref: (i, k)
        w_map = lambda j, i, k, gid_ref: (gid_ref[i], k, j)
        o_map = lambda j, i, k, gid_ref: (i, j)
    else:
        grid = (num_m, num_n, num_k)
        x_map = lambda i, j, k, gid_ref: (i, k)
        w_map = lambda i, j, k, gid_ref: (gid_ref[i], k, j)
        o_map = lambda i, j, k, gid_ref: (i, j)

    out_sorted = pl.pallas_call(
        grouped_linear_kernel,
        out_shape=jax.ShapeDtypeStruct((M_pad, N_pad), out_dtype),
        grid_spec=pltpu.PrefetchScalarGridSpec(
            num_scalar_prefetch=1,
            grid=grid,
            in_specs=[
                pl.BlockSpec((tm, tk), x_map),            # x row / K tile
                pl.BlockSpec((1, tk, tn), w_map),         # per-group weight tile
            ],
            out_specs=pl.BlockSpec((tm, tn), o_map),
            scratch_shapes=[pltpu.VMEM((tm, tn), jnp.float32)],
        ),
        compiler_params=pltpu.CompilerParams(
            dimension_semantics=("parallel", "parallel", "arbitrary"),
            vmem_limit_bytes=limit,
        ),
    )(gid, x_sorted, w_stack)

    # Un-permute rows and drop padded output columns.
    out = out_sorted[dest][:, :out_dim]
    return out.reshape(B, S, out_dim)


if __name__ == "__main__":
    B, S, in_dim, out_dim = 2, 8, 32, 32

    key = jax.random.PRNGKey(0)
    kx, km, kv, kt = jax.random.split(key, 4)

    x = jax.random.normal(kx, (B, S, in_dim), dtype=jnp.float32)
    visual_mask = jax.random.bernoulli(km, 0.5, (B, S))

    # Deterministic nn.Linear-style init (uniform +-1/sqrt(in_dim)), no bias.
    bound = 1.0 / (in_dim ** 0.5)
    w_v = jax.random.uniform(kv, (out_dim, in_dim), jnp.float32, -bound, bound)
    w_t = jax.random.uniform(kt, (out_dim, in_dim), jnp.float32, -bound, bound)

    # Reference in plain JAX (same semantics as the PyTorch module).
    ref = (x @ w_v.T) * visual_mask[:, :, None] + (x @ w_t.T) * (~visual_mask)[:, :, None]

    # fp32 MXU inputs (tight tolerance).  Weight packing happens ONCE here.
    params_f32 = prepare_weights(w_v, w_t)
    out = jax.block_until_ready(masked_dual_linear(params_f32, x, visual_mask))
    assert out.shape == (B, S, out_dim)
    assert jnp.allclose(out, ref, atol=1e-5, rtol=1e-5)

    # bf16 MXU inputs (recommended on v5e/v6e/v7x), fp32 accumulation kept.
    params_bf16 = prepare_weights(w_v, w_t, mxu_dtype=jnp.bfloat16)
    out_bf16 = jax.block_until_ready(masked_dual_linear(params_bf16, x, visual_mask))
    assert jnp.allclose(out_bf16, ref, atol=2e-2, rtol=2e-2)

    print("KERNEL_OK")
</pallas_src>

<mosaic_0001>
module attributes {stable_mosaic.version = 11 : i64} {
  func.func @grouped_linear_kernel(%arg0: i32, %arg1: i32, %arg2: i32, %arg3: memref<2xi32, #tpu.memory_space<smem>>, %arg4: memref<128x32xf32, #tpu.memory_space<vmem>>, %arg5: memref<1x32x128xf32, #tpu.memory_space<vmem>>, %arg6: memref<128x128xf32, #tpu.memory_space<vmem>>, %arg7: memref<128x128xf32, #tpu.memory_space<vmem>>) attributes {dimension_semantics = [#tpu.dimension_semantics<parallel>, #tpu.dimension_semantics<parallel>, #tpu.dimension_semantics<arbitrary>], iteration_bounds = array<i64: 2, 1, 1>, scalar_prefetch = 1 : i64, scratch_operands = 1 : i64, tpu.core_type = #tpu.core_type<tc>, window_params = [{transform_indices = @transform_0, window_bounds = array<i64: 128, 32>}, {transform_indices = @transform_1, window_bounds = array<i64: 1, 32, 128>}, {transform_indices = @transform_2, window_bounds = array<i64: 128, 128>}]} {
    %c0_i32 = arith.constant 0 : i32
    %0 = arith.cmpi eq, %arg2, %c0_i32 : i32
    %1 = arith.extui %0 : i1 to i32
    %c0_i32_0 = arith.constant 0 : i32
    %2 = arith.cmpi ne, %1, %c0_i32_0 : i32
    scf.if %2 {
      %cst_11 = arith.constant 0.000000e+00 : f32
      %13 = vector.broadcast %cst_11 : f32 to vector<128x128xf32>
      %c0_12 = arith.constant 0 : index
      %c0_13 = arith.constant 0 : index
      %14 = vector.load %arg7[%c0_12, %c0_13] : memref<128x128xf32, #tpu.memory_space<vmem>>, vector<128x128xf32>
      tpu.vector_store %arg7[%c0_12, %c0_13], %13 {strides = array<i32>} : memref<128x128xf32, #tpu.memory_space<vmem>>, vector<128x128xf32>,
    } else {
    }
    %c0 = arith.constant 0 : index
    %c0_1 = arith.constant 0 : index
    %3 = vector.load %arg7[%c0, %c0_1] : memref<128x128xf32, #tpu.memory_space<vmem>>, vector<128x128xf32>
    %c0_2 = arith.constant 0 : index
    %c0_3 = arith.constant 0 : index
    %4 = vector.load %arg4[%c0_2, %c0_3] : memref<128x32xf32, #tpu.memory_space<vmem>>, vector<128x32xf32>
    %c0_4 = arith.constant 0 : index
    %c0_5 = arith.constant 0 : index
    %c0_6 = arith.constant 0 : index
    %5 = vector.load %arg5[%c0_4, %c0_5, %c0_6] : memref<1x32x128xf32, #tpu.memory_space<vmem>>, vector<1x32x128xf32>
    %6 = vector.shape_cast %5 : vector<1x32x128xf32> to vector<32x128xf32>
    %cst = arith.constant dense<0.000000e+00> : vector<128x128xf32>
    %7 = tpu.matmul %4, %6, %cst {dimension_numbers = #tpu.dot_dimension_numbers<[1], [0], [0], [1], [0, 0, 1, 1], [], []>} : vector<128x32xf32>, vector<32x128xf32>, vector<128x128xf32> -> vector<128x128xf32>
    %8 = arith.addf %3, %7 : vector<128x128xf32>
    %c0_7 = arith.constant 0 : index
    %c0_8 = arith.constant 0 : index
    %9 = vector.load %arg7[%c0_7, %c0_8] : memref<128x128xf32, #tpu.memory_space<vmem>>, vector<128x128xf32>
    tpu.vector_store %arg7[%c0_7, %c0_8], %8 {strides = array<i32>} : memref<128x128xf32, #tpu.memory_space<vmem>>, vector<128x128xf32>,
    %c0_i32_9 = arith.constant 0 : i32
    %10 = arith.cmpi eq, %arg2, %c0_i32_9 : i32
    %11 = arith.extui %10 : i1 to i32
    %c0_i32_10 = arith.constant 0 : i32
    %12 = arith.cmpi ne, %11, %c0_i32_10 : i32
    scf.if %12 {
      %c0_11 = arith.constant 0 : index
      %c0_12 = arith.constant 0 : index
      %13 = vector.load %arg7[%c0_11, %c0_12] : memref<128x128xf32, #tpu.memory_space<vmem>>, vector<128x128xf32>
      %c0_13 = arith.constant 0 : index
      %c0_14 = arith.constant 0 : index
      %14 = vector.load %arg6[%c0_13, %c0_14] : memref<128x128xf32, #tpu.memory_space<vmem>>, vector<128x128xf32>
      tpu.vector_store %arg6[%c0_13, %c0_14], %13 {strides = array<i32>} : memref<128x128xf32, #tpu.memory_space<vmem>>, vector<128x128xf32>,
    } else {
    }
    return
  }
  func.func @transform_0(%arg0: i32, %arg1: i32, %arg2: i32, %arg3: memref<2xi32, #tpu.memory_space<smem>>) -> (i32, i32) {
    %c0_i32 = arith.constant 0 : i32
    return %arg0, %arg2 : i32, i32
  }
  func.func @transform_1(%arg0: i32, %arg1: i32, %arg2: i32, %arg3: memref<2xi32, #tpu.memory_space<smem>>) -> (i32, i32, i32) {
    %0 = arith.index_cast %arg0 : i32 to index
    %1 = memref.load %arg3[%0] : memref<2xi32, #tpu.memory_space<smem>>
    %c0_i32 = arith.constant 0 : i32
    return %1, %arg2, %arg1 : i32, i32, i32
  }
  func.func @transform_2(%arg0: i32, %arg1: i32, %arg2: i32, %arg3: memref<2xi32, #tpu.memory_space<smem>>) -> (i32, i32) {
    %c0_i32 = arith.constant 0 : i32
    return %arg0, %arg1 : i32, i32
  }
}

</mosaic_0001>

<bundles_post_ra>
// kernel: tpu_custom_call.1
= control target key start
LH: loop header
LB: loop body
LE: loop exit
PB: predicated region body
PF: predicated region fallthrough
CT: control target
= control target key end

     0   :  { %s1113_s0 = inlined_call_operand.vmem [shape: s32[2], index: 0, kind: input, shape index: {}]   ;;  %s1114_s1 = inlined_call_operand.vmem [shape: f32[256,32], index: 1, kind: input, shape index: {}]   ;;  %s1115_s2 = inlined_call_operand.vmem [shape: f32[2,32,128], index: 2, kind: input, shape index: {}]   ;;  %s1116_s3 = inlined_call_operand.hbm [shape: f32[256,128], index: 3, kind: output, shape index: {}]  }
   0x1   :  { %s8_s14 = sshll.u32 %s1113_s0, 4  ;;  %s9_s14 = int_to_ptr.vmem [resolvable:$true] %s8_s14 }
   0x2   :  { %s820_s15 = scalar_lea.vmem %s9_s14, 16  ;;  %p825_p1 = scmp.lt.s32.totalorder %s9_s14, %s9_s14 }
   0x3   :  { %p821_p0 = scmp.ne.s32.totalorder %s9_s14, %s820_s15  ;;  %p826_p2 = scmp.lt.s32.totalorder %s820_s15, %s820_s15 }
   0x5   :  { %p827_p3 = por %p826_p2, %p825_p1 }
   0x7   :  { %p828_p4 = pnand %p827_p3, %p821_p0 }
   0x9   :  { %831 = shalt.err (!%p828_p4)  }
   0xa   :  { %s912_s16 = smov [#allocation4]  }
   0xb   :  { %11 = dma.vmem_to_smem %s9_s14, 16, %s912_s16, [#allocation3] }
   0xc   :  { %882 = dma.done.wait [#allocation3], 16 }
   0xd   :  { %883 = vsyncadd [#allocation3], 4294967280 }
   0xe   :  { %13 = sfence }
   0xf   :  { %14 = vsyncpa [#allocation6], 0 }
  0x10   :  { %16 = vsyncpa [#allocation6 + $0x1], 0  ;;  %s939_s17 = smov 0   ;;  %s941_s18 = smov 0  }
  0x11   :  { %s943_s0 = smov 0   ;;  %s945_s19 = smov 0  }
  0x12   :  { %s947_s20 = smov 0   ;;  %s949_s21 = smov 0  }
  0x13 LB: > { %s669_s22 = sadd.s32 4294967295, %s910_s21   ;;  %s670_s23 = sadd.s32 4294967294, %s910_s21   ;;  %s910_s21 = sphi %s949_s21, %s22_s21   ;;  %s906_s20 = sphi %s947_s20, %s1123_s20   ;;  %s902_s19 = sphi %s945_s19, %s1122_s19   ;;  %s898_s0 = sphi %s943_s0, %s1121_s0   ;;  %s894_s18 = sphi %s941_s18, %s1120_s18   ;;  %s890_s17 = sphi %s939_s17, %s1119_s17  }
  0x14   : > { %s41_s24 = sadd.s32 1, %s906_s20  ;;  %s110_s25 = sadd.s32 1, %s898_s0 }
  0x15   : > { %p43_p5 = scmp.ge.s32.totalorder %s41_s24, 2  ;;  %p120_p6 = scmp.ne.s32.totalorder %s898_s0, %s894_s18 }
  0x16   : > { %p121_p7 = scmp.eq.s32.totalorder %s669_s22, 1  ;;  %p126_p8 = scmp.ne.s32.totalorder %s894_s18, %s890_s17 }
  0x17   : > { %s1125_s24 = smov (%p43_p5, %s41_s24), 0  ;;  %p127_p10 = scmp.eq.s32.totalorder %s670_s23, 1 }
  0x18   : > { %p979_p9 = por %p121_p7, %p120_p6  ;;  %s105_s27 = ssub.s32 %s906_s20, %s1125_s24 }
  0x19   : > { %p673_p11 = scmp.ge.s32.totalorder %s910_s21, 1  ;;  %p108_p12 = scmp.eq.s32.totalorder %s105_s27, 0 }
  0x1a   : > { %p986_p13 = por %p127_p10, %p126_p8  ;;  %p175_p0 = scmp.lt.s32.totalorder %s910_s21, 3 }
  0x1b   : > { %s992_s29 = scalar_select %p108_p12, %s898_s0, %s110_s25  }
  0x1c   : > { %p176_p1 = pnand %p673_p11, %p175_p0 }
  0x1d   : > { %s222_s30 = sld [smem:[#allocation4 + %s902_s19]] (!%p176_p1)  ;;  %s675_s4 = sshll.u32 (!%p176_p1), %s902_s19, 4 }
  0x1e   : > { %179 = sbr.rel (%p176_p1) target bundleno = 270 (0x10e), region = 28  ;;  %p214_p2 = scmp.lt.s32.totalorder (!%p176_p1), %s675_s4, 31 }
  0x1f   : > { %s210_s13 = sand.u32 (!%p176_p1), 1, %s894_s18   ;;  %s701_s16 = sshll.u32 (!%p176_p1), %s902_s19, 11 }
  0x20   : > { %s674_s14 = sshll.u32 (!%p176_p1), %s210_s13, 7  ;;  %s1058_s27 = scalar_lea.hbm (!%p176_p1), %s1116_s3, %s701_s16 }
  0x21   : > { %s1039_s15 = scalar_lea.vmem (!%p176_p1), [#allocation5], %s674_s14  ;;  %s1068_s19 = scalar_lea.sflag (!%p176_p1), [#allocation6], %s210_s13 }
  0x22   : > { %s570_s22 = sshll.u32 (!%p176_p1), %s1039_s15, 4  ;;  %s1060_s22 = int_to_ptr.vmem [resolvable:$true] %s570_s22 }
  0x23   : > { %s1127_s4 = smov (!%p214_p2, %s675_s4), 31  ;;  %vm294_vm0 = vcmask 261120   ;;  %p224_p3 = scmp.lt.s32.totalorder %s222_s30, 1 }
  0x24   : > { %s676_s5 = sshll.u32 %s1127_s4, 3  ;;  %s913_s4 = smov [#allocation5]  }
  0x25   : > { %s999_s8 = scalar_lea.vmem %s1114_s1, %s676_s5  ;;  %s1129_s30 = smov (!%p224_p3, %s222_s30), 1 }
  0x26   : > { %v274_v0 = vld [vmem:[%s999_s8] sm:$0xff]  ;;  %s700_s9 = sshll.u32 %s1129_s30, 5  ;;  %v275_v6 = vld [vmem:[%s999_s8 + $0x8] sm:$0xff]  ;;  %v276_v8 = vld [vmem:[%s999_s8 + $0x10] sm:$0xff]  ;;  %s832_s30 = scalar_lea.vmem %s1060_s22, 2048 }
  0x27   : > { %v282_v1 = vld [vmem:[%s999_s8 + $0x40] sm:$0xff]  ;;  %730 = vmatprep.mubr.msk.f32.mxu0 %vm294_vm0, %v274_v0  ;;  %s234_s12 = scalar_lea.vmem %s1115_s2, %s700_s9  ;;  %v283_v7 = vld [vmem:[%s999_s8 + $0x48] sm:$0xff]  ;;  %v284_v9 = vld [vmem:[%s999_s8 + $0x50] sm:$0xff]  ;;  %p833_p4 = scmp.ne.s32.totalorder %s1060_s22, %s832_s30 }
  0x28   : > { %742 = vmatprep.mubr.msk.f32.mxu1 %vm294_vm0, %v282_v1  ;;  %v293_v2 = vld [vmem:[%s234_s12 + $0x18] sm:$0xff]  ;;  %v292_v3 = vld [vmem:[%s234_s12 + $0x10] sm:$0xff]  ;;  %v291_v4 = vld [vmem:[%s234_s12 + $0x8] sm:$0xff]  ;;  %s836_s5 = sshll.u32 %s913_s4, 4  ;;  %s837_s5 = int_to_ptr.vmem [resolvable:$false] %s836_s5 }
  0x29   : > { %722 = vmatprep.subr.mxu0 %v293_v2  ;;  %754 = vmatprep.subr.mxu1 %v293_v2  ;;  %v290_v5 = vld [vmem:[%s234_s12] sm:$0xff]  ;;  %v277_v10 = vld [vmem:[%s999_s8 + $0x18] sm:$0xff]  ;;  %v279_v14 = vld [vmem:[%s999_s8 + $0x28] sm:$0xff]  ;;  %p834_p5 = pnand %p833_p4, %p979_p9  ;;  %s838_s6 = scalar_lea.vmem %s837_s5, 4096 }
  0x2a   : > { %723 = vmatpush3.msra.mxu0 %v293_v2  ;;  %758 = vmatpush3.msra.mxu1 %v293_v2  ;;  %v285_v11 = vld [vmem:[%s999_s8 + $0x58] sm:$0xff]  ;;  %v278_v12 = vld [vmem:[%s999_s8 + $0x20] sm:$0xff]  ;;  %v287_v15 = vld [vmem:[%s999_s8 + $0x68] sm:$0xff]  ;;  %p839_p7 = scmp.lt.s32.totalorder %s1060_s22, %s837_s5  ;;  %p840_p8 = scmp.lt.s32.totalorder %s838_s6, %s832_s30 }
  0x2b   : > { %724 = vmatprep.subr.mxu0 %v292_v3  ;;  %755 = vmatprep.subr.mxu1 %v292_v3  ;;  %v286_v13 = vld [vmem:[%s999_s8 + $0x60] sm:$0xff]  ;;  %v280_v16 = vld [vmem:[%s999_s8 + $0x30] sm:$0xff]  ;;  %v281_v18 = vld [vmem:[%s999_s8 + $0x38] sm:$0xff]  ;;  %p835_p6 = pneg %p834_p5 }
  0x2c   : > { %725 = vmatpush3.msra.mxu0 %v292_v3  ;;  %759 = vmatpush3.msra.mxu1 %v292_v3  ;;  %v288_v17 = vld [vmem:[%s999_s8 + $0x70] sm:$0xff]  ;;  %v289_v19 = vld [vmem:[%s999_s8 + $0x78] sm:$0xff]  ;;  %p841_p10 = por %p840_p8, %p839_p7 }
  0x2d   : > { %726 = vmatprep.subr.mxu0 %v291_v4  ;;  %756 = vmatprep.subr.mxu1 %v291_v4 }
  0x2e   : > { %727 = vmatpush3.msra.mxu0 %v291_v4  ;;  %760 = vmatpush3.msra.mxu1 %v291_v4  ;;  %p842_p11 = pnand %p841_p10, %p835_p6 }
  0x2f   : > { %728 = vmatprep.subr.mxu0 %v290_v5  ;;  %757 = vmatprep.subr.mxu1 %v290_v5 }
  0x30   : > { %729 = vmatpush3.msra.mxu0 %v290_v5  ;;  %761 = vmatpush3.msra.mxu1 %v290_v5 }
  0x31   : > { %731 = vmatmul.mubr.msk.f32.vlgmr.msra.gmra.mxu0 %vm294_vm0, %v275_v6  ;;  %743 = vmatmul.mubr.msk.f32.vlgmr.msra.gmra.mxu1 %vm294_vm0, %v283_v7 }
  0x32   : > { %733 = vmatprep.mubr.msk.f32.mxu0 %vm294_vm0, %v276_v8  ;;  %745 = vmatprep.mubr.msk.f32.mxu1 %vm294_vm0, %v284_v9 }
  0x35   : > { %734 = vmatmul.mubr.msk.f32.gmra.mxu0 %vm294_vm0, %v277_v10  ;;  %746 = vmatmul.mubr.msk.f32.gmra.mxu1 %vm294_vm0, %v285_v11 }
  0x36   : > { %736 = vmatprep.mubr.msk.f32.mxu0 %vm294_vm0, %v278_v12  ;;  %748 = vmatprep.mubr.msk.f32.mxu1 %vm294_vm0, %v286_v13 }
  0x39   : > { %737 = vmatmul.mubr.msk.f32.gmra.mxu0 %vm294_vm0, %v279_v14  ;;  %749 = vmatmul.mubr.msk.f32.gmra.mxu1 %vm294_vm0, %v287_v15 }
  0x3a   : > { %739 = vmatprep.mubr.msk.f32.mxu0 %vm294_vm0, %v280_v16  ;;  %751 = vmatprep.mubr.msk.f32.mxu1 %vm294_vm0, %v288_v17 }
  0x3d   : > { %740 = vmatmul.mubr.msk.f32.gmra.mxu0 %vm294_vm0, %v281_v18  ;;  %752 = vmatmul.mubr.msk.f32.gmra.mxu1 %vm294_vm0, %v289_v19 }
  0xf1   : > { %v732_v20 = vpop.f32.mrf.mxu0  ;;  %v744_v21 = vpop.f32.mrf.mxu1 }
  0xf2   : > { %540 = vst [vmem:[%s1039_s15 + $0x8] sm:$0xff] %v732_v20  ;;  %548 = vst [vmem:[%s1039_s15 + $0x48] sm:$0xff] %v744_v21 }
  0xf3   : > { %v409_v22 = vpop.f32.mrf.mxu0  ;;  %v449_v23 = vpop.f32.mrf.mxu1 }
  0xf4   : > { %539 = vst [vmem:[%s1039_s15] sm:$0xff] %v409_v22  ;;  %547 = vst [vmem:[%s1039_s15 + $0x40] sm:$0xff] %v449_v23 }
  0xf5   : > { %v735_v24 = vpop.f32.mrf.mxu0  ;;  %v747_v25 = vpop.f32.mrf.mxu1 }
  0xf6   : > { %542 = vst [vmem:[%s1039_s15 + $0x18] sm:$0xff] %v735_v24  ;;  %550 = vst [vmem:[%s1039_s15 + $0x58] sm:$0xff] %v747_v25 }
  0xf7   : > { %v419_v26 = vpop.f32.mrf.mxu0  ;;  %v459_v27 = vpop.f32.mrf.mxu1 }
  0xf8   : > { %541 = vst [vmem:[%s1039_s15 + $0x10] sm:$0xff] %v419_v26  ;;  %549 = vst [vmem:[%s1039_s15 + $0x50] sm:$0xff] %v459_v27 }
  0xf9   : > { %v738_v28 = vpop.f32.mrf.mxu0  ;;  %v750_v29 = vpop.f32.mrf.mxu1 }
  0xfa   : > { %544 = vst [vmem:[%s1039_s15 + $0x28] sm:$0xff] %v738_v28  ;;  %552 = vst [vmem:[%s1039_s15 + $0x68] sm:$0xff] %v750_v29 }
  0xfb   : > { %v429_v30 = vpop.f32.mrf.mxu0  ;;  %v469_v31 = vpop.f32.mrf.mxu1 }
  0xfc   : > { %543 = vst [vmem:[%s1039_s15 + $0x20] sm:$0xff] %v429_v30  ;;  %551 = vst [vmem:[%s1039_s15 + $0x60] sm:$0xff] %v469_v31 }
  0xfd   : > { %v741_v32 = vpop.f32.mrf.mxu0  ;;  %v753_v33 = vpop.f32.mrf.mxu1 }
  0xfe   : > { %546 = vst [vmem:[%s1039_s15 + $0x38] sm:$0xff] %v741_v32  ;;  %554 = vst [vmem:[%s1039_s15 + $0x78] sm:$0xff] %v753_v33 }
  0xff   : > { %v439_v34 = vpop.f32.mrf.mxu0  ;;  %v479_v35 = vpop.f32.mrf.mxu1 }
 0x100   : > { %545 = vst [vmem:[%s1039_s15 + $0x30] sm:$0xff] %v439_v34  ;;  %553 = vst [vmem:[%s1039_s15 + $0x70] sm:$0xff] %v479_v35 }
 0x101   : > { %845 = shalt.err (!%p842_p11)
}
 0x102   : > { %s846_s7 = scalar_lea.hbm %s1058_s27, 2048  ;;  %s850_s10 = scalar_lea.hbm %s1116_s3, 4096 }
 0x103   : > { %p847_p12 = scmp.ne.s32.totalorder %s1058_s27, %s846_s7  ;;  %p851_p2 = scmp.lt.s32.totalorder %s1058_s27, %s1116_s3 }
 0x104   : > { %p852_p3 = scmp.lt.s32.totalorder %s850_s10, %s846_s7 }
 0x105   : > { %p848_p0 = pnand %p847_p12, %p979_p9 }
 0x106   : > { %p853_p4 = por %p852_p3, %p851_p2 }
 0x107   : > { %p849_p1 = pneg %p848_p0 }
 0x109   : > { %p854_p5 = pnand %p853_p4, %p849_p1 }
 0x10b   : > { %857 = shalt.err (!%p854_p5)
}
 0x10c   : > { %s914_s13 = smov 128   ;;  %s915_s14 = smov 8  }
 0x10d   : > { %762 = dma.vmem_to_hbm [thread:$0]  (%p979_p9), %s1060_s22, 2048, %s1058_s27, %s1068_s19, %s914_s13, %s914_s13, %s915_s14  }
 0x10e PF: > { %p768_p6 = scmp.ge.s32.totalorder %s910_s21, 2  ;;  %s585_s15 = sand.u32 1, %s890_s17  }
 0x10f   : > { %s586_s16 = scalar_lea.sflag [#allocation6], %s585_s15 }
 0x110   : > { %p765_p7 = pnand %p768_p6, %p986_p13 }
 0x112   : > { %p766_p8 = pneg %p765_p7 }
 0x114   : > { %885 = dma.done.wait (%p766_p8), %s586_s16, 2048  }
 0x115   : > { %887 = vsyncadd (%p766_p8), %s586_s16, 4294965248  ;;  %s22_s21 = sadd.s32 1, %s910_s21   ;;  %s1119_s17 = smov %s894_s18 }
 0x116   : > { %p19_p10 = scmp.ge.s32.totalorder %s22_s21, 4   ;;  %s1120_s18 = smov %s898_s0 }
 0x117   : > { %s1121_s0 = smov %s992_s29  ;;  %s1122_s19 = smov %s906_s20 }
 0x118   : > { %s1123_s20 = smov %s1125_s24  ;;  %21 = sbr.rel (!%p19_p10) target bundleno = 19 (0x13), region = 74 }
 0x11d   :  { %591 = vsyncpa [#allocation6], 1 }
 0x11e   :  { %593 = vsyncpa [#allocation6 + $0x1], 1 }

</bundles_post_ra>
